<compile_context>
chip_gen: v6e
topology: v6e:2x2x1
jax: 0.10.0
libtpu: 0.0.40
codegen_flags: <defaults>
</compile_context>

<pallas_src>
import jax
import jax.numpy as jnp
from jax.experimental import pallas as pl
from jax.experimental.pallas import tpu as pltpu


def projection_kernel(x_ref, w1_ref, b1_ref, w2_ref, b2_ref, o_ref):
    # First GEMM + bias + tanh in f32 (tanh goes to the EUP, off the MXU/VALU
    # critical slots).
    h = jnp.dot(x_ref[...], w1_ref[...], preferred_element_type=jnp.float32)
    h = jnp.tanh(h + b1_ref[...])                                   # (B, D) f32
    # Second GEMM against this grid step's W2 column tile.
    y = jnp.dot(h.astype(w2_ref.dtype), w2_ref[...],
                preferred_element_type=jnp.float32)
    y = y + b2_ref[...]                                             # (B, TN) f32
    o_ref[...] = y.astype(o_ref.dtype)


def _round_up(v, m):
    return -(-v // m) * m


def _pick_tile_n(b_pad, e, d, out_pad, itm_x, itm_w, itm_out,
                 vmem_budget_bytes, tn_cap):
    """Largest multiple-of-128 N-tile whose double-buffered working set fits."""
    resident = b_pad * e * itm_x + e * d * itm_w + d * 4            # x, W1, b1
    per_col = d * itm_w + 4 + b_pad * itm_out                       # W2, b2, out
    avail = max(vmem_budget_bytes - resident, 128 * 2 * per_col)
    # 2x for double-buffering of the streamed operands / output.
    tn = (avail // (2 * per_col)) // 128 * 128
    tn = max(128, min(int(tn), int(tn_cap), out_pad))
    return _round_up(tn, 128)


def projection_layer(x, w1, b1, w2, b2, prefix_len, *,
                     compute_dtype=None, tn_max=2048, vmem_limit_bytes=None):
    """Pallas equivalent of ProjectionLayer.forward.

    x:  (B, encoder_dim)
    w1: (encoder_dim, llama_dim)           b1: (llama_dim,) or (1, llama_dim)
    w2: (llama_dim, llama_dim*prefix_len)  b2: (llama_dim*prefix_len,) or (1, ...)
    returns (B, prefix_len, llama_dim)

    Weights are stored transposed vs. nn.Linear so y = x @ W + b on the MXU.
    compute_dtype=jnp.bfloat16 casts x/w1/w2 for the matmuls (f32 accumulation,
    f32 bias + tanh), halving the HBM bytes of the dominant W2 stream.
    """
    orig_dtype = x.dtype
    B, E = x.shape
    D = w1.shape[1]
    out_dim = w2.shape[1]
    assert out_dim % prefix_len == 0
    llama_dim = out_dim // prefix_len

    # Biases stay f32 (accurate bias-add + tanh on every chip, incl. v5e).
    b1 = jnp.asarray(b1, jnp.float32).reshape(1, D)
    b2 = jnp.asarray(b2, jnp.float32).reshape(1, out_dim)

    if compute_dtype is not None:
        x = x.astype(compute_dtype)
        w1 = w1.astype(compute_dtype)
        w2 = w2.astype(compute_dtype)

    itm_x = jnp.dtype(x.dtype).itemsize
    itm_w = jnp.dtype(w2.dtype).itemsize
    itm_out = jnp.dtype(orig_dtype).itemsize

    # Sublane / lane alignment: full sublane groups of rows, 128-aligned columns.
    row_align = 8 if itm_x == 4 else 16
    b_pad = _round_up(B, row_align)
    out_pad = _round_up(out_dim, 128)

    # Biggest N-tile that fits the VMEM budget (fewest steps, lane-dense stores).
    budget = vmem_limit_bytes if vmem_limit_bytes is not None else (24 << 20)
    tn = _pick_tile_n(b_pad, E, D, out_pad, itm_x, itm_w, itm_out, budget, tn_max)
    out_pad = _round_up(out_pad, tn)
    grid_n = out_pad // tn

    if b_pad != B:
        x = jnp.pad(x, ((0, b_pad - B), (0, 0)))
    if out_pad != out_dim:
        w2 = jnp.pad(w2, ((0, 0), (0, out_pad - out_dim)))
        b2 = jnp.pad(b2, ((0, 0), (0, out_pad - out_dim)))

    cost = pl.CostEstimate(
        flops=2 * b_pad * (E * D * grid_n + D * out_pad),
        transcendentals=b_pad * D * grid_n,
        bytes_accessed=(x.size * itm_x + w1.size * itm_w
                        + b1.size * 4 + w2.size * itm_w + b2.size * 4
                        + b_pad * out_pad * itm_out),
    )

    flat = pl.pallas_call(
        projection_kernel,
        out_shape=jax.ShapeDtypeStruct((b_pad, out_pad), orig_dtype),
        grid=(grid_n,),
        in_specs=[
            pl.BlockSpec((b_pad, E), lambda j: (0, 0)),   # x: resident
            pl.BlockSpec((E, D),     lambda j: (0, 0)),   # W1: resident
            pl.BlockSpec((1, D),     lambda j: (0, 0)),   # b1: resident
            pl.BlockSpec((D, tn),    lambda j: (0, j)),   # W2: streamed tiles
            pl.BlockSpec((1, tn),    lambda j: (0, j)),   # b2: streamed tiles
        ],
        out_specs=pl.BlockSpec((b_pad, tn), lambda j: (0, j)),
        compiler_params=pltpu.CompilerParams(
            dimension_semantics=("parallel",),            # megacore on v7x
            vmem_limit_bytes=vmem_limit_bytes),
        cost_estimate=cost,
    )(x, w1, b1, w2, b2)

    # x.view(B, prefix_len, -1) from the PyTorch module (drop padding first).
    return flat[:B, :out_dim].reshape(B, prefix_len, llama_dim)


if __name__ == "__main__":
    # Small shapes consistent with the module's forward.
    B = 2
    encoder_dim = 32
    llama_dim = 32
    prefix_len = 10

    key = jax.random.PRNGKey(0)
    k_x, k_w1, k_b1, k_w2, k_b2 = jax.random.split(key, 5)

    x = jax.random.normal(k_x, (B, encoder_dim), dtype=jnp.float32)
    w1 = 0.05 * jax.random.normal(k_w1, (encoder_dim, llama_dim), dtype=jnp.float32)
    b1 = 0.01 * jax.random.normal(k_b1, (llama_dim,), dtype=jnp.float32)
    w2 = 0.05 * jax.random.normal(k_w2, (llama_dim, llama_dim * prefix_len), dtype=jnp.float32)
    b2 = 0.01 * jax.random.normal(k_b2, (llama_dim * prefix_len,), dtype=jnp.float32)

    # --- f32 path: exact semantics of the PyTorch module ---
    out = projection_layer(x, w1, b1, w2, b2, prefix_len)
    out = jax.block_until_ready(out)
    ref = (jnp.tanh(x @ w1 + b1) @ w2 + b2).reshape(B, prefix_len, llama_dim)
    assert out.shape == (B, prefix_len, llama_dim), out.shape
    assert jnp.allclose(out, ref, atol=1e-5, rtol=1e-5)

    # --- bf16-weight path: same kernel, half the HBM bytes on the W2 stream ---
    out_bf = projection_layer(x, w1, b1, w2, b2, prefix_len,
                              compute_dtype=jnp.bfloat16)
    out_bf = jax.block_until_ready(out_bf)
    xb, w1b, w2b = (a.astype(jnp.bfloat16) for a in (x, w1, w2))
    h_ref = jnp.tanh(jnp.dot(xb, w1b, preferred_element_type=jnp.float32) + b1)
    ref_bf = (jnp.dot(h_ref.astype(jnp.bfloat16), w2b,
                      preferred_element_type=jnp.float32) + b2)
    ref_bf = ref_bf.reshape(B, prefix_len, llama_dim)
    assert out_bf.shape == (B, prefix_len, llama_dim), out_bf.shape
    assert jnp.allclose(out_bf, ref_bf.astype(out_bf.dtype), atol=2e-2, rtol=2e-2)

    print("KERNEL_OK")
</pallas_src>

<mosaic_0001>
module attributes {stable_mosaic.version = 11 : i64} {
  func.func @projection_kernel(%arg0: i32, %arg1: memref<8x32xf32, #tpu.memory_space<vmem>>, %arg2: memref<32x32xf32, #tpu.memory_space<vmem>>, %arg3: memref<1x32xf32, #tpu.memory_space<vmem>>, %arg4: memref<32x384xf32, #tpu.memory_space<vmem>>, %arg5: memref<1x384xf32, #tpu.memory_space<vmem>>, %arg6: memref<8x384xf32, #tpu.memory_space<vmem>>) attributes {dimension_semantics = [#tpu.dimension_semantics<parallel>], iteration_bounds = array<i64: 1>, scalar_prefetch = 0 : i64, scratch_operands = 0 : i64, tpu.core_type = #tpu.core_type<tc>, window_params = [{pipeline_mode = #tpu.pipeline_mode<synchronous>, transform_indices = @transform_0, window_bounds = array<i64: 8, 32>}, {pipeline_mode = #tpu.pipeline_mode<synchronous>, transform_indices = @transform_1, window_bounds = array<i64: 32, 32>}, {pipeline_mode = #tpu.pipeline_mode<synchronous>, transform_indices = @transform_2, window_bounds = array<i64: 1, 32>}, {transform_indices = @transform_3, window_bounds = array<i64: 32, 384>}, {transform_indices = @transform_4, window_bounds = array<i64: 1, 384>}, {transform_indices = @transform_5, window_bounds = array<i64: 8, 384>}]} {
    %c0 = arith.constant 0 : index
    %c0_0 = arith.constant 0 : index
    %0 = vector.load %arg1[%c0, %c0_0] : memref<8x32xf32, #tpu.memory_space<vmem>>, vector<8x32xf32>
    %c0_1 = arith.constant 0 : index
    %c0_2 = arith.constant 0 : index
    %1 = vector.load %arg2[%c0_1, %c0_2] : memref<32x32xf32, #tpu.memory_space<vmem>>, vector<32x32xf32>
    %cst = arith.constant dense<0.000000e+00> : vector<8x32xf32>
    %2 = tpu.matmul %0, %1, %cst {dimension_numbers = #tpu.dot_dimension_numbers<[1], [0], [0], [1], [0, 0, 1, 1], [], []>} : vector<8x32xf32>, vector<32x32xf32>, vector<8x32xf32> -> vector<8x32xf32>
    %c0_3 = arith.constant 0 : index
    %c0_4 = arith.constant 0 : index
    %3 = vector.load %arg3[%c0_3, %c0_4] : memref<1x32xf32, #tpu.memory_space<vmem>>, vector<1x32xf32>
    %4 = vector.broadcast %3 : vector<1x32xf32> to vector<8x32xf32>
    %5 = arith.addf %2, %4 : vector<8x32xf32>
    %6 = math.tanh %5 : vector<8x32xf32>
    %c0_5 = arith.constant 0 : index
    %c0_6 = arith.constant 0 : index
    %7 = vector.load %arg4[%c0_5, %c0_6] : memref<32x384xf32, #tpu.memory_space<vmem>>, vector<32x384xf32>
    %cst_7 = arith.constant dense<0.000000e+00> : vector<8x384xf32>
    %8 = tpu.matmul %6, %7, %cst_7 {dimension_numbers = #tpu.dot_dimension_numbers<[1], [0], [0], [1], [0, 0, 1, 1], [], []>} : vector<8x32xf32>, vector<32x384xf32>, vector<8x384xf32> -> vector<8x384xf32>
    %c0_8 = arith.constant 0 : index
    %c0_9 = arith.constant 0 : index
    %9 = vector.load %arg5[%c0_8, %c0_9] : memref<1x384xf32, #tpu.memory_space<vmem>>, vector<1x384xf32>
    %10 = vector.broadcast %9 : vector<1x384xf32> to vector<8x384xf32>
    %11 = arith.addf %8, %10 : vector<8x384xf32>
    %c0_10 = arith.constant 0 : index
    %c0_11 = arith.constant 0 : index
    %12 = vector.load %arg6[%c0_10, %c0_11] : memref<8x384xf32, #tpu.memory_space<vmem>>, vector<8x384xf32>
    tpu.vector_store %arg6[%c0_10, %c0_11], %11 {strides = array<i32>} : memref<8x384xf32, #tpu.memory_space<vmem>>, vector<8x384xf32>,
    return
  }
  func.func @transform_0(%arg0: i32) -> (i32, i32) {
    %c0_i32 = arith.constant 0 : i32
    %c0_i32_0 = arith.constant 0 : i32
    %c0_i32_1 = arith.constant 0 : i32
    return %c0_i32, %c0_i32_0 : i32, i32
  }
  func.func @transform_1(%arg0: i32) -> (i32, i32) {
    %c0_i32 = arith.constant 0 : i32
    %c0_i32_0 = arith.constant 0 : i32
    %c0_i32_1 = arith.constant 0 : i32
    return %c0_i32, %c0_i32_0 : i32, i32
  }
  func.func @transform_2(%arg0: i32) -> (i32, i32) {
    %c0_i32 = arith.constant 0 : i32
    %c0_i32_0 = arith.constant 0 : i32
    %c0_i32_1 = arith.constant 0 : i32
    return %c0_i32, %c0_i32_0 : i32, i32
  }
  func.func @transform_3(%arg0: i32) -> (i32, i32) {
    %c0_i32 = arith.constant 0 : i32
    %c0_i32_0 = arith.constant 0 : i32
    return %c0_i32, %arg0 : i32, i32
  }
  func.func @transform_4(%arg0: i32) -> (i32, i32) {
    %c0_i32 = arith.constant 0 : i32
    %c0_i32_0 = arith.constant 0 : i32
    return %c0_i32, %arg0 : i32, i32
  }
  func.func @transform_5(%arg0: i32) -> (i32, i32) {
    %c0_i32 = arith.constant 0 : i32
    %c0_i32_0 = arith.constant 0 : i32
    return %c0_i32, %arg0 : i32, i32
  }
}

</mosaic_0001>

<bundles_post_ra>
// kernel: tpu_custom_call.1
= control target key start
LH: loop header
LB: loop body
LE: loop exit
PB: predicated region body
PF: predicated region fallthrough
CT: control target
= control target key end

     0   :  { %10 = vsyncpa [#allocation3], 0  ;;  %s536_s0 = inlined_call_operand.hbm [shape: f32[8,32], index: 0, kind: input, shape index: {}]   ;;  %s537_s1 = inlined_call_operand.hbm [shape: f32[32,32], index: 1, kind: input, shape index: {}]   ;;  %s538_s2 = inlined_call_operand.vmem [shape: f32[1,32], index: 2, kind: input, shape index: {}]   ;;  %s539_s3 = inlined_call_operand.hbm [shape: f32[32,384], index: 3, kind: input, shape index: {}]   ;;  %s540_s4 = inlined_call_operand.vmem [shape: f32[1,384], index: 4, kind: input, shape index: {}]   ;;  %s541_s5 = inlined_call_operand.hbm [shape: f32[8,384], index: 5, kind: output, shape index: {}]  }
   0x1   :  { %11 = vsyncpa [#allocation6], 0 }
   0x2   :  { %12 = vsyncpa [#allocation4], 0  ;;  %s473_s18 = smov [#allocation5]  }
   0x3   :  { %s28_s19 = sshll.u32 %s473_s18, 4  ;;  %s29_s19 = int_to_ptr.vmem [resolvable:$true] %s28_s19 }
   0x4   :  { %s395_s20 = scalar_lea.vmem %s29_s19, 512  ;;  %p400_p1 = scmp.lt.s32.totalorder %s29_s19, %s29_s19 }
   0x5   :  { %p396_p0 = scmp.ne.s32.totalorder %s29_s19, %s395_s20  ;;  %p401_p2 = scmp.lt.s32.totalorder %s395_s20, %s395_s20 }
   0x7   :  { %p402_p3 = por %p401_p2, %p400_p1 }
   0x9   :  { %p403_p4 = pnand %p402_p3, %p396_p0 }
   0xb   :  { %406 = shalt.err (!%p403_p4)
}
   0xc   :  { %s474_s21 = smov 128   ;;  %s475_s22 = smov 8  }
   0xd   :  { %34 = dma.hbm_to_vmem [thread:$0]  %s537_s1, 512, %s29_s19, [#allocation6], %s474_s21, %s474_s21, %s475_s22  }
   0xe   :  { %s476_s25 = smov [#allocation2]   ;;  %s477_s27 = smov [#allocation7]  }
   0xf   :  { %s19_s26 = sshll.u32 %s476_s25, 4  ;;  %s42_s28 = sshll.u32 %s477_s27, 4  ;;  %s20_s26 = int_to_ptr.vmem [resolvable:$true] %s19_s26  ;;  %s43_s28 = int_to_ptr.vmem [resolvable:$true] %s42_s28 }
  0x10   :  { %s415_s29 = scalar_lea.vmem %s20_s26, 128  ;;  %p420_p6 = scmp.lt.s32.totalorder %s20_s26, %s20_s26 }
  0x11   :  { %p416_p5 = scmp.ne.s32.totalorder %s20_s26, %s415_s29  ;;  %p421_p7 = scmp.lt.s32.totalorder %s415_s29, %s415_s29 }
  0x13   :  { %p422_p8 = por %p421_p7, %p420_p6 }
  0x15   :  { %p423_p9 = pnand %p422_p8, %p416_p5 }
  0x17   :  { %426 = shalt.err (!%p423_p9)
}
  0x18   :  { %22 = dma.hbm_to_vmem [thread:$0]  %s536_s0, 128, %s20_s26, [#allocation3]  }
  0x19   :  { %s435_s7 = scalar_lea.vmem %s43_s28, 1536  ;;  %p440_p11 = scmp.lt.s32.totalorder %s43_s28, %s43_s28 }
  0x1a   :  { %p436_p10 = scmp.ne.s32.totalorder %s43_s28, %s435_s7  ;;  %p441_p12 = scmp.lt.s32.totalorder %s435_s7, %s435_s7 }
  0x1c   :  { %p442_p13 = por %p441_p12, %p440_p11 }
  0x1e   :  { %p443_p0 = pnand %p442_p13, %p436_p10 }
  0x20   :  { %446 = shalt.err (!%p443_p0)
}
  0x21   :  { %s478_s1 = smov 384   ;;  %s479_s8 = smov 24  }
  0x22   :  { %48 = dma.hbm_to_vmem [thread:$0]  %s539_s3, 1536, %s43_s28, [#allocation6], %s478_s1, %s478_s1, %s479_s8  }
  0x23   :  { %467 = dma.done.wait [#allocation3], 128  }
  0x24   :  { %468 = vsyncadd [#allocation3], 4294967168 }
  0x25   :  { %469 = dma.done.wait [#allocation6], 2048  }
  0x26   :  { %470 = vsyncadd [#allocation6], 4294965248  ;;  %v480_v0 = vmov 0.0   ;;  %vm481_vm0 = vmmov 0   ;;  %v64_v1 = vld [vmem:[#allocation5 + $0x18] sm:$0xff]  ;;  %v63_v2 = vld [vmem:[#allocation5 + $0x10] sm:$0xff]  ;;  %v161_v23 = vlaneseq }
  0x27   :  { %353 = vmatprep.subr.mxu0 %v480_v0  ;;  %361 = vmatprep.mubr.msk.f32.mxu0 %vm481_vm0, %v480_v0  ;;  %v62_v3 = vld [vmem:[#allocation5 + $0x8] sm:$0xff]  ;;  %v61_v4 = vld [vmem:[#allocation5] sm:$0xff]  ;;  %v60_v5 = vld [vmem:[#allocation2] sm:$0xff]  ;;  %vm72_vm1 = vcmask 261120  }
  0x28   :  { %243 = vmatprep.mubr.f32.mxu1 %v480_v0  ;;  %354 = vmatpush3.msra.mxu0 %v64_v1  ;;  %v157_v6 = vld [vmem:[#allocation7 + $0x50] sm:$0xff]  ;;  %v156_v7 = vld [vmem:[#allocation7 + $0x48] sm:$0xff]  ;;  %v158_v8 = vld [vmem:[#allocation7 + $0x58] sm:$0xff]  ;;  %v162_v24 = vshrl.u32 %v161_v23, 7 }
  0x29   :  { %355 = vmatprep.subr.mxu0 %v480_v0  ;;  %203 = vmatprep.subr.mxu1 %v157_v6  ;;  %v154_v9 = vld [vmem:[#allocation7 + $0x38] sm:$0xff]  ;;  %v153_v10 = vld [vmem:[#allocation7 + $0x30] sm:$0xff]  ;;  %v155_v11 = vld [vmem:[#allocation7 + $0x40] sm:$0xff] }
  0x2a   :  { %356 = vmatpush3.msra.mxu0 %v63_v2  ;;  %204 = vmatpush1.msra.mxu1 %v156_v7  ;;  %v151_v12 = vld [vmem:[#allocation7 + $0x20] sm:$0xff]  ;;  %v152_v13 = vld [vmem:[#allocation7 + $0x28] sm:$0xff]  ;;  %v150_v14 = vld [vmem:[#allocation7 + $0x18] sm:$0xff]  ;;  %v163_v25 = vsub.s32 0, %v162_v24  ;;  %v171_v26 = vsub.s32 2, %v162_v24  ;;  %v167_v28 = vsub.s32 1, %v162_v24 }
  0x2b   :  { %357 = vmatprep.subr.mxu0 %v480_v0  ;;  %205 = vmatprep.subr.mxu1 %v154_v9  ;;  %v148_v15 = vld [vmem:[#allocation7 + $0x8] sm:$0xff]  ;;  %v149_v16 = vld [vmem:[#allocation7 + $0x10] sm:$0xff]  ;;  %v147_v17 = vld [vmem:[#allocation7] sm:$0xff] }
  0x2c   :  { %358 = vmatpush3.msra.mxu0 %v62_v3  ;;  %206 = vmatpush1.msra.mxu1 %v153_v10  ;;  %v339_v18 = vld [vmem:[%s538_s2] ss:$0 sm:$0xff]  ;;  %s482_s2 = smov [#allocation8]  }
  0x2d   :  { %359 = vmatprep.subr.mxu0 %v480_v0  ;;  %207 = vmatprep.subr.mxu1 %v151_v12  ;;  %v159_v27 = vld [vmem:[%s540_s4] sm:$0x7]  ;;  %s329_s13 = sshll.u32 %s482_s2, 4  ;;  %s330_s13 = int_to_ptr.vmem [resolvable:$true] %s329_s13 }
  0x2e   :  { %360 = vmatpush3.msra.mxu0 %v61_v4  ;;  %208 = vmatpush1.msra.mxu1 %v150_v14  ;;  %v164_v29 = vrot.slane %v159_v27, %v163_v25  ;;  %v172_v30 = vrot.slane %v159_v27, %v171_v26  ;;  %v168_v31 = vrot.slane %v159_v27, %v167_v28  ;;  %s447_s14 = scalar_lea.vmem %s330_s13, 384  ;;  %p452_p2 = scmp.lt.s32.totalorder %s330_s13, %s330_s13 }
  0x2f   :  { %362 = vmatmul.mubr.msk.f32.vlgmr.msra.gmra.mxu0 %vm72_vm1, %v60_v5  ;;  %364 = vmatprep.subr.mxu0 %v480_v0  ;;  %p448_p1 = scmp.ne.s32.totalorder %s330_s13, %s447_s14  ;;  %p453_p3 = scmp.lt.s32.totalorder %s447_s14, %s447_s14 }
  0x30   :  { %372 = vmatprep.mubr.msk.f32.mxu0 %vm481_vm0, %v480_v0  ;;  %365 = vmatpush3.msra.mxu0 %v158_v8 }
  0x31   :  { %366 = vmatprep.subr.mxu0 %v480_v0  ;;  %209 = vmatprep.subr.mxu1 %v148_v15  ;;  %p454_p4 = por %p453_p3, %p452_p2 }
  0x32   :  { %367 = vmatpush3.msra.mxu0 %v155_v11  ;;  %210 = vmatpush1.msra.mxu1 %v147_v17 }
  0x33   :  { %368 = vmatprep.subr.mxu0 %v480_v0  ;;  %p455_p5 = pnand %p454_p4, %p448_p1 }
  0x34   :  { %369 = vmatpush3.msra.mxu0 %v152_v13 }
  0x35   :  { %370 = vmatprep.subr.mxu0 %v480_v0 }
  0x36   :  { %371 = vmatpush3.msra.mxu0 %v149_v16 }
  0xef   :  { %v142_v19 = vpop.f32.mrf.mxu0 }
  0xf0   :  { %v143_v20 = vadd.f32 %v339_v18, %v142_v19 }
  0xf1   :  { %v363_v21 = vpop.f32.mrf.mxu0 }
  0xf2   :  { %385 = vtanh.f32 %v143_v20 }
  0xff   :  { %v386_v22 = vpop.eup %385 }
 0x100   :  { %341 = vmatmul.mubr.msk.f32.vlgmr.msra.gmra.mxu1 %vm72_vm1, %v386_v22  ;;  %373 = vmatmul.mubr.msk.f32.vlgmr.msra.gmra.mxu0 %vm72_vm1, %v386_v22 }
 0x1c0   :  { %v245_v32 = vpop.f32.mrf.mxu1  ;;  %v316_v33 = vpop.f32.mrf.mxu0 }
 0x1c1   :  { %v246_v34 = vadd.f32 %v245_v32, %v164_v29  ;;  %v317_v35 = vadd.f32 %v316_v33, %v172_v30 }
 0x1c2   :  { %v247_v36 = vpop.f32.mrf.mxu1  ;;  %v374_v37 = vpop.f32.mrf.mxu0 }
 0x1c3   :  { %320 = vst [vmem:[#allocation8] sm:$0xff] %v246_v34  ;;  %322 = vst [vmem:[#allocation8 + $0x10] sm:$0xff] %v317_v35  ;;  %v248_v38 = vadd.f32 %v247_v36, %v168_v31 }
 0x1c5   :  { %321 = vst [vmem:[#allocation8 + $0x8] sm:$0xff] %v248_v38 }
 0x1c6   :  { %458 = shalt.err (!%p455_p5)
}
 0x1c7   :  { %332 = dma.vmem_to_hbm [thread:$0]  %s330_s13, 384, %s541_s5, [#allocation4]  }
 0x1c8   :  { %471 = dma.done.wait [#allocation4], 384  }
 0x1c9   :  { %472 = vsyncadd [#allocation4], 4294966912 }
 0x1ca   :  { %336 = vsyncpa [#allocation3], 1 }
 0x1cb   :  { %337 = vsyncpa [#allocation6], 1 }
 0x1cc   :  { %338 = vsyncpa [#allocation4], 1 }

</bundles_post_ra>
